<compile_context>
chip_gen: v7x
topology: tpu7x:2x2x1
jax: 0.10.0
libtpu: 0.0.40
codegen_flags: <defaults>
</compile_context>

<pallas_src>
from functools import partial

import jax
import jax.numpy as jnp
from jax.experimental import pallas as pl
from jax.experimental.pallas import tpu as pltpu


def _round_up(x, m):
    return ((x + m - 1) // m) * m


# ----------------------------------------------------------------------------
# Pallas kernel: one tile of patch rows x (resident) projection weight + bias
# ----------------------------------------------------------------------------
def _patch_embed_kernel(x_ref, w_ref, b_ref, o_ref):
    # x_ref: (TM, K_pad), w_ref: (K_pad, E_pad), b_ref: (1, E_pad) f32,
    # o_ref: (TM, E_pad).  f32 accumulation on the MXU, f32 bias add.
    acc = jnp.dot(x_ref[...], w_ref[...], preferred_element_type=jnp.float32)
    o_ref[...] = (acc + b_ref[...]).astype(o_ref.dtype)


def _choose_tm(m, k_pad, e_pad, in_bytes, out_bytes,
               max_tm=2048, row_budget_bytes=20 << 20):
    """Patch-row tile: MXU-aligned (256), VMEM-budgeted, even grid for v7x."""
    if m <= 0:
        return 8
    align = 256
    row_bytes = 2 * (k_pad * in_bytes + e_pad * out_bytes)  # x2: double buffering
    tm = (row_budget_bytes // row_bytes) // align * align
    tm = int(min(max_tm, max(align, tm)))
    if m <= tm:
        # Single grid step: shrink the tile to the (8-aligned) problem size.
        return _round_up(m, 8)
    # Multiple steps: keep the step count even (and >= 8 when there is enough
    # work) so the single "parallel" axis splits evenly across v7x's two TCs.
    steps = pl.cdiv(m, tm)
    if m >= 8 * align:
        steps = max(steps, 8)
    steps = steps + (steps % 2)
    tm256 = min(max(_round_up(pl.cdiv(m, steps), align), align), max_tm)
    if pl.cdiv(m, tm256) % 2 == 0:
        return tm256
    # Fall back to 8-row alignment to land exactly on an even step count.
    tm8 = min(max(_round_up(pl.cdiv(m, steps), 8), 8), max_tm)
    return tm8


# ----------------------------------------------------------------------------
# Glue: im2col in Conv2d (c, kh, kw) order; handles overlapping patches.
# ----------------------------------------------------------------------------
def _extract_patches(x, patch_size, strides):
    """x: [B, C, H, W] -> ([B*N, C*Ph*Pw], nh, nw); rows ordered (b, fh, tw)."""
    B, C, H, W = x.shape
    ph, pw = patch_size
    sh, sw = strides
    nh = (H - ph) // sh + 1
    nw = (W - pw) // sw + 1
    if (sh, sw) == (ph, pw) and H % ph == 0 and W % pw == 0:
        # Non-overlapping fast path: pure reshape/transpose (no gather).
        p = x.reshape(B, C, nh, ph, nw, pw).transpose(0, 2, 4, 1, 3, 5)
        p = p.reshape(B * nh * nw, C * ph * pw)
    else:
        # Overlapping / strided path (AST default: 16x16 kernel, stride 10).
        # conv_general_dilated_patches emits (c, kh, kw)-ordered features — the
        # same order as Conv2d weight.reshape(E, -1) — and the NHWC out spec
        # makes the flatten to (B*N, K) a free reshape.
        p = jax.lax.conv_general_dilated_patches(
            x, filter_shape=(ph, pw), window_strides=(sh, sw), padding="VALID",
            dimension_numbers=("NCHW", "OIHW", "NHWC"))
        p = p.reshape(B * nh * nw, C * ph * pw)
    return p, nh, nw


@partial(jax.jit,
         static_argnames=("patch_size", "strides", "compute_dtype", "out_dtype"))
def patch_embed_forward(x, weight, bias, patch_size, strides=None,
                        compute_dtype=jnp.bfloat16, out_dtype=None):
    """Conv2d(C, E, kernel=patch_size, stride=strides)(x).flatten(2).transpose(1,2).

    x: [B, C, H, W]; weight: [E, C, Ph, Pw]; bias: [E]  ->  [B, N, E]
    """
    if isinstance(patch_size, int):
        patch_size = (patch_size, patch_size)
    if strides is None:
        strides = patch_size
    elif isinstance(strides, int):
        strides = (strides, strides)

    B, C, H, W = x.shape
    E = weight.shape[0]
    ph, pw = patch_size
    sh, sw = strides
    nh = (H - ph) // sh + 1
    nw = (W - pw) // sw + 1
    N = nh * nw
    M = B * N
    K = C * ph * pw

    if out_dtype is None:
        out_dtype = x.dtype
    if compute_dtype is None:
        compute_dtype = x.dtype
    in_bytes = jnp.dtype(compute_dtype).itemsize
    out_bytes = jnp.dtype(out_dtype).itemsize

    # Pad K / E to lane-dense multiples of 128 (zero rows/cols are exact no-ops).
    K_pad = _round_up(max(K, 128), 128)
    E_pad = _round_up(max(E, 128), 128)
    TM = _choose_tm(M, K_pad, E_pad, in_bytes, out_bytes)
    grid_len = pl.cdiv(M, TM)
    M_pad = grid_len * TM

    # Cast once, up front: patch extraction is pure data movement, so bf16
    # halves its HBM traffic too.
    x = x.astype(compute_dtype)
    weight = weight.astype(compute_dtype)

    # TODO(synk): fuse patch extraction into the Pallas pipeline (x kept in HBM
    # via memory_space=pl.ANY + manual DMA of per-frequency stripes) to avoid
    # the HBM round-trip of the expanded im2col matrix entirely.
    patches, _, _ = _extract_patches(x, patch_size, strides)     # (M, K)

    # Single pad covering both the row (M) and depth (K) padding.
    if M_pad != M or K_pad != K:
        patches = jnp.pad(patches, ((0, M_pad - M), (0, K_pad - K)))

    w_mat = weight.reshape(E, K).T                     # (K, E), (c, kh, kw) order
    b_mat = bias.astype(jnp.float32).reshape(1, E)     # bias added in f32
    if K_pad != K or E_pad != E:
        w_mat = jnp.pad(w_mat, ((0, K_pad - K), (0, E_pad - E)))
    if E_pad != E:
        b_mat = jnp.pad(b_mat, ((0, 0), (0, E_pad - E)))

    # Explicit VMEM limit: double-buffered row blocks + resident weight/bias +
    # headroom, capped well below v7x's 64 MiB per-TensorCore VMEM.
    vmem_need = (2 * TM * (K_pad * in_bytes + E_pad * out_bytes)
                 + 2 * K_pad * E_pad * in_bytes
                 + 2 * E_pad * 4)
    vmem_limit = int(min(vmem_need + (8 << 20), 48 << 20))

    out_flat = pl.pallas_call(
        _patch_embed_kernel,
        out_shape=jax.ShapeDtypeStruct((M_pad, E_pad), out_dtype),
        grid_spec=pltpu.PrefetchScalarGridSpec(
            num_scalar_prefetch=0,
            grid=(grid_len,),
            in_specs=[
                pl.BlockSpec((TM, K_pad), lambda i: (i, 0)),
                # TODO(synk): pipeline_mode=pl.Buffered(1) on the two
                # grid-invariant operands below would drop their 2nd buffer.
                pl.BlockSpec((K_pad, E_pad), lambda i: (0, 0)),
                pl.BlockSpec((1, E_pad), lambda i: (0, 0)),
            ],
            out_specs=pl.BlockSpec((TM, E_pad), lambda i: (i, 0)),
        ),
        compiler_params=pltpu.CompilerParams(
            dimension_semantics=("parallel",),
            vmem_limit_bytes=vmem_limit,
        ),
    )(patches, w_mat, b_mat)

    # Skip the trailing copy when nothing was padded (AST: E=768, M multiple of TM).
    if M_pad == M and E_pad == E:
        out = out_flat
    elif E_pad == E:
        out = out_flat[:M]
    else:
        out = out_flat[:M, :E]
    return out.reshape(B, N, E)


@partial(jax.jit,
         static_argnames=("patch_size", "strides", "compute_dtype", "out_dtype"))
def ast_patch_embed(spectrogram, weight, bias, patch_size, strides,
                    compute_dtype=jnp.bfloat16, out_dtype=None):
    """ASTModel.forward prelude: x.unsqueeze(1).transpose(2, 3), then PatchEmbed."""
    x = spectrogram[:, None, :, :]      # (B, 1, T, F)
    x = jnp.swapaxes(x, 2, 3)           # (B, 1, F, T): freq = H, time = W
    return patch_embed_forward(x, weight, bias, patch_size, strides,
                               compute_dtype=compute_dtype, out_dtype=out_dtype)


# ----------------------------------------------------------------------------
# Pure-JAX reference: Conv2d(stride) + bias + flatten(2) + transpose(1, 2)
# ----------------------------------------------------------------------------
def reference_forward(x, weight, bias, patch_size, strides):
    y = jax.lax.conv_general_dilated(
        x.astype(jnp.float32), weight.astype(jnp.float32),
        window_strides=strides, padding="VALID",
        dimension_numbers=("NCHW", "OIHW", "NCHW"))
    y = y + bias.astype(jnp.float32).reshape(1, -1, 1, 1)
    B, E, h, w = y.shape
    return y.reshape(B, E, h * w).transpose(0, 2, 1)


if __name__ == "__main__":
    key = jax.random.PRNGKey(0)
    k1, k2, k3, k4, k5, k6 = jax.random.split(key, 6)

    # ---- Test 1: AST geometry (overlapping 16x16, stride 10), exact f32 path --
    B, tdim, fdim = 2, 48, 32
    P, fstride, tstride, E = 16, 10, 10, 128
    spec = jax.random.normal(k1, (B, tdim, fdim), dtype=jnp.float32)
    w = jax.random.normal(k2, (E, 1, P, P), dtype=jnp.float32) * 0.02
    b = jax.random.normal(k3, (E,), dtype=jnp.float32) * 0.02

    out = ast_patch_embed(spec, w, b, (P, P), (fstride, tstride),
                          compute_dtype=jnp.float32)
    out = jax.block_until_ready(out)

    x_img = jnp.swapaxes(spec[:, None, :, :], 2, 3)
    ref = reference_forward(x_img, w, b, (P, P), (fstride, tstride))
    f_dim = (fdim - P) // fstride + 1
    t_dim = (tdim - P) // tstride + 1
    assert out.shape == (B, f_dim * t_dim, E), out.shape
    err1 = float(jnp.max(jnp.abs(out - ref)))
    assert jnp.allclose(out, ref, atol=2e-3, rtol=2e-3), err1

    # ---- Test 2: non-overlapping path, default bf16 compute, odd E/K ---------
    B2, C2, H2, W2 = 2, 1, 32, 32
    P2, E2 = 8, 96
    x2 = jax.random.normal(k4, (B2, C2, H2, W2), dtype=jnp.float32)
    w2 = jax.random.normal(k5, (E2, C2, P2, P2), dtype=jnp.float32) * 0.02
    b2 = jax.random.normal(k6, (E2,), dtype=jnp.float32) * 0.02

    out2 = patch_embed_forward(x2, w2, b2, P2, P2)      # default bf16 compute
    out2 = jax.block_until_ready(out2)
    ref2 = reference_forward(x2, w2, b2, (P2, P2), (P2, P2))
    assert out2.shape == (B2, (H2 // P2) * (W2 // P2), E2), out2.shape
    err2 = float(jnp.max(jnp.abs(out2.astype(jnp.float32) - ref2)))
    assert jnp.allclose(out2.astype(jnp.float32), ref2, atol=3e-2, rtol=3e-2), err2

    print("KERNEL_OK")
</pallas_src>

<mosaic_0001>
module attributes {stable_mosaic.version = 11 : i64} {
  func.func @_patch_embed_kernel(%arg0: i32, %arg1: memref<16x256xf32, #tpu.memory_space<vmem>>, %arg2: memref<256x128xf32, #tpu.memory_space<vmem>>, %arg3: memref<1x128xf32, #tpu.memory_space<vmem>>, %arg4: memref<16x128xf32, #tpu.memory_space<vmem>>) attributes {dimension_semantics = [#tpu.dimension_semantics<parallel>], iteration_bounds = array<i64: 1>, scalar_prefetch = 0 : i64, scratch_operands = 0 : i64, tpu.core_type = #tpu.core_type<tc>, window_params = [{transform_indices = @transform_0, window_bounds = array<i64: 16, 256>}, {pipeline_mode = #tpu.pipeline_mode<synchronous>, transform_indices = @transform_1, window_bounds = array<i64: 256, 128>}, {pipeline_mode = #tpu.pipeline_mode<synchronous>, transform_indices = @transform_2, window_bounds = array<i64: 1, 128>}, {transform_indices = @transform_3, window_bounds = array<i64: 16, 128>}]} {
    %c0 = arith.constant 0 : index
    %c0_0 = arith.constant 0 : index
    %0 = vector.load %arg1[%c0, %c0_0] : memref<16x256xf32, #tpu.memory_space<vmem>>, vector<16x256xf32>
    %c0_1 = arith.constant 0 : index
    %c0_2 = arith.constant 0 : index
    %1 = vector.load %arg2[%c0_1, %c0_2] : memref<256x128xf32, #tpu.memory_space<vmem>>, vector<256x128xf32>
    %cst = arith.constant dense<0.000000e+00> : vector<16x128xf32>
    %2 = tpu.matmul %0, %1, %cst {dimension_numbers = #tpu.dot_dimension_numbers<[1], [0], [0], [1], [0, 0, 1, 1], [], []>} : vector<16x256xf32>, vector<256x128xf32>, vector<16x128xf32> -> vector<16x128xf32>
    %c0_3 = arith.constant 0 : index
    %c0_4 = arith.constant 0 : index
    %3 = vector.load %arg3[%c0_3, %c0_4] : memref<1x128xf32, #tpu.memory_space<vmem>>, vector<1x128xf32>
    %4 = vector.broadcast %3 : vector<1x128xf32> to vector<16x128xf32>
    %5 = arith.addf %2, %4 : vector<16x128xf32>
    %c0_5 = arith.constant 0 : index
    %c0_6 = arith.constant 0 : index
    %6 = vector.load %arg4[%c0_5, %c0_6] : memref<16x128xf32, #tpu.memory_space<vmem>>, vector<16x128xf32>
    tpu.vector_store %arg4[%c0_5, %c0_6], %5 {strides = array<i32>} : memref<16x128xf32, #tpu.memory_space<vmem>>, vector<16x128xf32>,
    return
  }
  func.func @transform_0(%arg0: i32) -> (i32, i32) {
    %c0_i32 = arith.constant 0 : i32
    %c0_i32_0 = arith.constant 0 : i32
    return %arg0, %c0_i32 : i32, i32
  }
  func.func @transform_1(%arg0: i32) -> (i32, i32) {
    %c0_i32 = arith.constant 0 : i32
    %c0_i32_0 = arith.constant 0 : i32
    %c0_i32_1 = arith.constant 0 : i32
    return %c0_i32, %c0_i32_0 : i32, i32
  }
  func.func @transform_2(%arg0: i32) -> (i32, i32) {
    %c0_i32 = arith.constant 0 : i32
    %c0_i32_0 = arith.constant 0 : i32
    %c0_i32_1 = arith.constant 0 : i32
    return %c0_i32, %c0_i32_0 : i32, i32
  }
  func.func @transform_3(%arg0: i32) -> (i32, i32) {
    %c0_i32 = arith.constant 0 : i32
    %c0_i32_0 = arith.constant 0 : i32
    return %arg0, %c0_i32 : i32, i32
  }
}

</mosaic_0001>

<bundles_post_ra>
// kernel: patch_embed_forward.1
= control target key start
LH: loop header
LB: loop body
LE: loop exit
PB: predicated region body
PF: predicated region fallthrough
CT: control target
= control target key end

     0   :  { %s411_s0 = inlined_call_operand.vmem [shape: f32[16,256], index: 0, kind: input, shape index: {}]   ;;  %s412_s1 = inlined_call_operand.vmem [shape: f32[256,128], index: 1, kind: input, shape index: {}]   ;;  %s413_s2 = inlined_call_operand.vmem [shape: f32[1,128], index: 2, kind: input, shape index: {}]   ;;  %s414_s3 = inlined_call_operand.hbm [shape: f32[16,128], index: 3, kind: output, shape index: {}]  }
   0x1   :  { %v35_v0 = vld [vmem:[%s412_s1 + $0x80] sm:$0xff]  ;;  %v36_v1 = vld [vmem:[%s412_s1 + $0x88] sm:$0xff]  ;;  %v37_v5 = vld [vmem:[%s412_s1 + $0x90] sm:$0xff] }
   0x2   :  { %v19_v2 = vld [vmem:[%s412_s1] sm:$0xff]  ;;  %v190_v3 = vpack.c.bf16 %v36_v1, %v35_v0  ;;  %v20_v4 = vld [vmem:[%s412_s1 + $0x8] sm:$0xff]  ;;  %v38_v6 = vld [vmem:[%s412_s1 + $0x98] sm:$0xff] }
   0x3   :  { %v192_v7 = vpack.c.bf16 %v20_v4, %v19_v2  ;;  %v194_v8 = vpack.c.bf16 %v38_v6, %v37_v5  ;;  %v21_v9 = vld [vmem:[%s412_s1 + $0x10] sm:$0xff]  ;;  %v22_v10 = vld [vmem:[%s412_s1 + $0x18] sm:$0xff]  ;;  %v39_v11 = vld [vmem:[%s412_s1 + $0xa0] sm:$0xff] }
   0x4   :  { %191 = vmatprep.subr.bf16.mxu0 %v190_v3  ;;  %222 = vmatprep.subr.bf16.mxu1 %v190_v3  ;;  %v40_v12 = vld [vmem:[%s412_s1 + $0xa8] sm:$0xff]  ;;  %v196_v13 = vpack.c.bf16 %v22_v10, %v21_v9  ;;  %v23_v15 = vld [vmem:[%s412_s1 + $0x20] sm:$0xff]  ;;  %v41_v17 = vld [vmem:[%s412_s1 + $0xb0] sm:$0xff] }
   0x5   :  { %193 = vmatpush3.bf16.msra.mxu0 %v192_v7  ;;  %230 = vmatpush3.bf16.msra.mxu1 %v192_v7  ;;  %v198_v14 = vpack.c.bf16 %v40_v12, %v39_v11  ;;  %v24_v16 = vld [vmem:[%s412_s1 + $0x28] sm:$0xff]  ;;  %v42_v18 = vld [vmem:[%s412_s1 + $0xb8] sm:$0xff]  ;;  %v25_v21 = vld [vmem:[%s412_s1 + $0x30] sm:$0xff] }
   0x6   :  { %195 = vmatprep.subr.bf16.mxu0 %v194_v8  ;;  %223 = vmatprep.subr.bf16.mxu1 %v194_v8  ;;  %v200_v19 = vpack.c.bf16 %v24_v16, %v23_v15  ;;  %v202_v20 = vpack.c.bf16 %v42_v18, %v41_v17  ;;  %v26_v22 = vld [vmem:[%s412_s1 + $0x38] sm:$0xff]  ;;  %v43_v23 = vld [vmem:[%s412_s1 + $0xc0] sm:$0xff]  ;;  %v44_v24 = vld [vmem:[%s412_s1 + $0xc8] sm:$0xff] }
   0x7   :  { %v16_v25 = vld [vmem:[%s411_s0 + $0x8] sm:$0xff]  ;;  %v18_v26 = vld [vmem:[%s411_s0 + $0x18] sm:$0xff]  ;;  %v204_v27 = vpack.c.bf16 %v26_v22, %v25_v21 }
   0x8   :  { %122 = vmatprep.mubr.f32.mxu0 %v16_v25 }
   0x9   :  { %197 = vmatpush3.bf16.msra.mxu0 %v196_v13  ;;  %231 = vmatpush3.bf16.msra.mxu1 %v196_v13 }
   0xa   :  { %199 = vmatprep.subr.bf16.mxu0 %v198_v14  ;;  %224 = vmatprep.subr.bf16.mxu1 %v198_v14 }
   0xd   :  { %201 = vmatpush3.bf16.msra.mxu0 %v200_v19  ;;  %232 = vmatpush3.bf16.msra.mxu1 %v200_v19 }
   0xe   :  { %8 = vsyncpa [#allocation3], 0  ;;  %203 = vmatprep.subr.bf16.mxu0 %v202_v20  ;;  %225 = vmatprep.subr.bf16.mxu1 %v202_v20  ;;  %v206_v28 = vpack.c.bf16 %v44_v24, %v43_v23  ;;  %v27_v29 = vld [vmem:[%s412_s1 + $0x40] sm:$0xff]  ;;  %v28_v30 = vld [vmem:[%s412_s1 + $0x48] sm:$0xff] }
   0xf   :  { %v45_v31 = vld [vmem:[%s412_s1 + $0xd0] sm:$0xff]  ;;  %v46_v32 = vld [vmem:[%s412_s1 + $0xd8] sm:$0xff]  ;;  %127 = vmatprep.mubr.f32.mxu1 %v18_v26  ;;  %v208_v33 = vpack.c.bf16 %v28_v30, %v27_v29  ;;  %v47_v37 = vld [vmem:[%s412_s1 + $0xe0] sm:$0xff] }
  0x10   :  { %v210_v34 = vpack.c.bf16 %v46_v32, %v45_v31  ;;  %v29_v35 = vld [vmem:[%s412_s1 + $0x50] sm:$0xff]  ;;  %v30_v36 = vld [vmem:[%s412_s1 + $0x58] sm:$0xff]  ;;  %v48_v38 = vld [vmem:[%s412_s1 + $0xe8] sm:$0xff] }
  0x11   :  { %205 = vmatpush3.bf16.msra.mxu0 %v204_v27  ;;  %233 = vmatpush3.bf16.msra.mxu1 %v204_v27  ;;  %v212_v39 = vpack.c.bf16 %v30_v36, %v29_v35  ;;  %v214_v40 = vpack.c.bf16 %v48_v38, %v47_v37  ;;  %v31_v41 = vld [vmem:[%s412_s1 + $0x60] sm:$0xff]  ;;  %v32_v42 = vld [vmem:[%s412_s1 + $0x68] sm:$0xff]  ;;  %v49_v43 = vld [vmem:[%s412_s1 + $0xf0] sm:$0xff] }
  0x12   :  { %207 = vmatprep.subr.bf16.mxu0 %v206_v28  ;;  %226 = vmatprep.subr.bf16.mxu1 %v206_v28  ;;  %v50_v44 = vld [vmem:[%s412_s1 + $0xf8] sm:$0xff]  ;;  %v216_v45 = vpack.c.bf16 %v32_v42, %v31_v41  ;;  %v33_v47 = vld [vmem:[%s412_s1 + $0x70] sm:$0xff]  ;;  %v15_v50 = vld [vmem:[%s411_s0] sm:$0xff] }
  0x13   :  { %v218_v46 = vpack.c.bf16 %v50_v44, %v49_v43  ;;  %v34_v48 = vld [vmem:[%s412_s1 + $0x78] sm:$0xff]  ;;  %v17_v51 = vld [vmem:[%s411_s0 + $0x10] sm:$0xff]  ;;  %s265_s1 = smov [#allocation2]   ;;  %v151_v54 = vld [vmem:[%s413_s2] ss:$0 sm:$0xff] }
  0x14   :  { %v220_v49 = vpack.c.bf16 %v34_v48, %v33_v47  ;;  %s140_s30 = sshll.u32 %s265_s1, 4  ;;  %s141_s30 = int_to_ptr.vmem [resolvable:$true] %s140_s30 }
  0x15   :  { %209 = vmatpush3.bf16.msra.mxu0 %v208_v33  ;;  %234 = vmatpush3.bf16.msra.mxu1 %v208_v33  ;;  %s241_s0 = scalar_lea.vmem %s141_s30, 256  ;;  %p246_p1 = scmp.lt.s32.totalorder %s141_s30, %s141_s30 }
  0x16   :  { %211 = vmatprep.subr.bf16.mxu0 %v210_v34  ;;  %227 = vmatprep.subr.bf16.mxu1 %v210_v34  ;;  %p242_p0 = scmp.ne.s32.totalorder %s141_s30, %s241_s0  ;;  %p247_p2 = scmp.lt.s32.totalorder %s241_s0, %s241_s0 }
  0x18   :  { %p248_p3 = por %p247_p2, %p246_p1 }
  0x19   :  { %213 = vmatpush3.bf16.msra.mxu0 %v212_v39  ;;  %235 = vmatpush3.bf16.msra.mxu1 %v212_v39 }
  0x1a   :  { %215 = vmatprep.subr.bf16.mxu0 %v214_v40  ;;  %228 = vmatprep.subr.bf16.mxu1 %v214_v40  ;;  %p249_p4 = pnand %p248_p3, %p242_p0 }
  0x1d   :  { %217 = vmatpush3.bf16.msra.mxu0 %v216_v45  ;;  %236 = vmatpush3.bf16.msra.mxu1 %v216_v45 }
  0x1e   :  { %219 = vmatprep.subr.bf16.mxu0 %v218_v46  ;;  %229 = vmatprep.subr.bf16.mxu1 %v218_v46 }
  0x21   :  { %221 = vmatpush3.bf16.msra.mxu0 %v220_v49  ;;  %237 = vmatpush3.bf16.msra.mxu1 %v220_v49 }
  0x24   :  { %123 = vmatmul.mubr.f32.vlgmr.msra.gmra.mrb[0].mxu0 %v15_v50  ;;  %128 = vmatmul.mubr.f32.vlgmr.msra.gmra.mrb[0].mxu1 %v17_v51 }
  0xf7   :  { %v184_v52 = vpop.f32.mrb[0].mxu0  ;;  %v187_v53 = vpop.f32.mrb[0].mxu1 }
  0xf8   :  { %v185_v55 = vpop.f32.mrb[1].mxu0  ;;  %v188_v56 = vpop.f32.mrb[1].mxu1 }
  0xf9   :  { %v186_v57 = vadd.f32 %v185_v55, %v184_v52  ;;  %v189_v58 = vadd.f32 %v188_v56, %v187_v53 }
  0xfb   :  { %v125_v59 = vadd.f32 %v186_v57, %v151_v54  ;;  %v130_v60 = vadd.f32 %v189_v58, %v151_v54 }
  0xfd   :  { %133 = vst [vmem:[#allocation2] sm:$0xff] %v125_v59  ;;  %134 = vst [vmem:[#allocation2 + $0x8] sm:$0xff] %v130_v60 }
  0xfe   :  { %252 = shalt.err (!%p249_p4)
}
  0xff   :  { %s253_s2 = scalar_lea.hbm %s414_s3, 256 }
 0x100   :  { %p254_p5 = scmp.ne.s32.totalorder %s414_s3, %s253_s2  ;;  %p257_p6 = scmp.lt.u32.totalorder %s253_s2, %s414_s3 }
 0x102   :  { %p259_p7 = pnand %p257_p6, %p254_p5 }
 0x104   :  { %262 = shalt.err (!%p259_p7)
}
 0x105   :  { %s266_s12 = smov 128   ;;  %s267_s13 = smov 8  }
 0x106   :  { %146 = dma.vmem_to_hbm [thread:$0]  %s141_s30, 256, %s414_s3, [#allocation3], %s266_s12, %s266_s12, %s267_s13  }
 0x107   :  { %263 = dma.done.wait [#allocation3], 256  }
 0x108   :  { %264 = vsyncadd [#allocation3], 4294967040 }
 0x109   :  { %150 = vsyncpa [#allocation3], 1 }

</bundles_post_ra>
